<compile_context>
chip_gen: v6e
topology: v6e:2x2x1
jax: 0.10.0
libtpu: 0.0.40
codegen_flags: <defaults>
</compile_context>

<pallas_src>
import functools

import jax
import jax.numpy as jnp
import numpy as np
from jax.experimental import pallas as pl
from jax.experimental.pallas import tpu as pltpu


def _round_up(x, m):
    return ((x + m - 1) // m) * m


def _matmul_kernel(x_ref, w_ref, o_ref):
    """x_ref: (TM, K_pad), w_ref: (K_pad, Cout_pad), o_ref: (TM, Cout_pad)."""
    o_ref[...] = jnp.dot(
        x_ref[...], w_ref[...], preferred_element_type=jnp.float32
    ).astype(o_ref.dtype)


def _build_im2col(x_nchw, kH, kW, stride, pad, H_out, W_out):
    """NCHW -> (N*H_out*W_out, kH*kW*Cin) im2col slab (XLA glue, no kernel)."""
    N, Cin, H, W = x_nchw.shape
    x_nhwc = jnp.transpose(x_nchw, (0, 2, 3, 1))
    x_pad = jnp.pad(x_nhwc, ((0, 0), (pad, pad), (pad, pad), (0, 0)))
    patches = []
    for kh in range(kH):
        for kw in range(kW):
            patch = jax.lax.slice(
                x_pad,
                (0, kh, kw, 0),
                (N,
                 kh + (H_out - 1) * stride + 1,
                 kw + (W_out - 1) * stride + 1,
                 Cin),
                (1, stride, stride, 1),
            )  # (N, H_out, W_out, Cin)
            patches.append(patch)
    # K ordering: (kh, kw, cin) -- must match the weight reshape below.
    im2col = jnp.concatenate(patches, axis=-1)
    return im2col.reshape(N * H_out * W_out, kH * kW * Cin)


def _build_weight_matrix(weight_oihw, Cin, groups):
    """OIHW -> (kH*kW*Cin, Cout); block-diagonal over groups."""
    Cout, cin_pg, kH, kW = weight_oihw.shape
    cout_pg = Cout // groups
    w_t = jnp.transpose(weight_oihw, (2, 3, 1, 0))  # (kH, kW, cin_pg, Cout)
    if groups == 1:
        w_full = w_t  # (kH, kW, Cin, Cout)
    else:
        w_full = jnp.zeros((kH, kW, Cin, Cout), weight_oihw.dtype)
        for g in range(groups):
            w_full = w_full.at[
                :, :, g * cin_pg:(g + 1) * cin_pg,
                g * cout_pg:(g + 1) * cout_pg
            ].set(w_t[:, :, :, g * cout_pg:(g + 1) * cout_pg])
    return w_full.reshape(kH * kW * Cin, Cout)


def conv2d_pallas(x_nchw, weight_oihw, *, stride=1, groups=1):
    """Equivalent of PyTorch module C: Conv2d(kSize, stride, padding=(k-1)//2,
    bias=False, groups=groups). x_nchw: (N, Cin, H, W); weight: (Cout, Cin//g, kH, kW)."""
    N, Cin, H, W = x_nchw.shape
    Cout, cin_pg, kH, kW = weight_oihw.shape
    assert cin_pg * groups == Cin and Cout % groups == 0
    pad = (kH - 1) // 2

    H_out = (H + 2 * pad - kH) // stride + 1
    W_out = (W + 2 * pad - kW) // stride + 1

    # ---- wrapper-side layout plumbing (im2col + block-diag weight) ----------
    x_mat = _build_im2col(x_nchw, kH, kW, stride, pad, H_out, W_out)
    w_mat = _build_weight_matrix(weight_oihw, Cin, groups)

    M = N * H_out * W_out
    K = kH * kW * Cin

    # Lane-dense padding: last dims -> multiples of 128, M -> sublane multiple.
    K_pad = _round_up(K, 128)
    Cout_pad = _round_up(Cout, 128)
    if M <= 1024:
        TM = _round_up(M, 8)          # single grid step for tiny problems
    else:
        TM = 512                       # tile M for larger problems
    M_pad = _round_up(M, TM)

    x_mat = jnp.pad(x_mat, ((0, M_pad - M), (0, K_pad - K)))
    w_mat = jnp.pad(w_mat, ((0, K_pad - K), (0, Cout_pad - Cout)))

    # NOTE: for real image sizes K_pad/weights stay resident per step; if K or
    # Cout grow large, add a K grid axis with a VMEM accumulator (P3).
    out_mat = pl.pallas_call(
        _matmul_kernel,
        out_shape=jax.ShapeDtypeStruct((M_pad, Cout_pad), x_nchw.dtype),
        grid_spec=pltpu.PrefetchScalarGridSpec(
            num_scalar_prefetch=0,
            grid=(M_pad // TM,),
            in_specs=[
                pl.BlockSpec((TM, K_pad), lambda i: (i, 0)),
                pl.BlockSpec((K_pad, Cout_pad), lambda i: (0, 0)),
            ],
            out_specs=pl.BlockSpec((TM, Cout_pad), lambda i: (i, 0)),
        ),
        compiler_params=pltpu.CompilerParams(
            dimension_semantics=("parallel",)),
    )(x_mat, w_mat)

    out = out_mat[:M, :Cout].reshape(N, H_out, W_out, Cout)
    return jnp.transpose(out, (0, 3, 1, 2))   # NHWC -> NCHW


def _reference_conv(x_nchw, weight_oihw, *, stride=1, groups=1):
    pad = (weight_oihw.shape[2] - 1) // 2
    return jax.lax.conv_general_dilated(
        x_nchw, weight_oihw,
        window_strides=(stride, stride),
        padding=((pad, pad), (pad, pad)),
        dimension_numbers=("NCHW", "OIHW", "NCHW"),
        feature_group_count=groups,
    )


if __name__ == "__main__":
    key = jax.random.PRNGKey(0)
    kx, kw1, kw2 = jax.random.split(key, 3)

    # Module config: C(nIn=4, nOut=8, kSize=3, stride=1, group=1)
    N, Cin, H, W = 2, 4, 16, 16
    Cout, kSize, stride, group = 8, 3, 1, 1

    x = jax.random.normal(kx, (N, Cin, H, W), dtype=jnp.float32)
    w = jax.random.normal(kw1, (Cout, Cin // group, kSize, kSize),
                          dtype=jnp.float32) * 0.1

    out = conv2d_pallas(x, w, stride=stride, groups=group)
    jax.block_until_ready(out)
    ref = _reference_conv(x, w, stride=stride, groups=group)
    np.testing.assert_allclose(np.asarray(out), np.asarray(ref),
                               rtol=1e-4, atol=1e-4)

    # Grouped path: C(nIn=4, nOut=8, kSize=3, group=2)
    w2 = jax.random.normal(kw2, (Cout, Cin // 2, kSize, kSize),
                           dtype=jnp.float32) * 0.1
    out2 = conv2d_pallas(x, w2, stride=1, groups=2)
    jax.block_until_ready(out2)
    ref2 = _reference_conv(x, w2, stride=1, groups=2)
    np.testing.assert_allclose(np.asarray(out2), np.asarray(ref2),
                               rtol=1e-4, atol=1e-4)

    # Strided down-sampling path: C(nIn=4, nOut=8, kSize=3, stride=2)
    out3 = conv2d_pallas(x, w, stride=2, groups=1)
    jax.block_until_ready(out3)
    ref3 = _reference_conv(x, w, stride=2, groups=1)
    np.testing.assert_allclose(np.asarray(out3), np.asarray(ref3),
                               rtol=1e-4, atol=1e-4)

    print("KERNEL_OK")
</pallas_src>

<mosaic_0001>
module attributes {stable_mosaic.version = 11 : i64} {
  func.func @_matmul_kernel(%arg0: i32, %arg1: memref<512x128xf32, #tpu.memory_space<vmem>>, %arg2: memref<128x128xf32, #tpu.memory_space<vmem>>, %arg3: memref<512x128xf32, #tpu.memory_space<vmem>>) attributes {dimension_semantics = [#tpu.dimension_semantics<parallel>], iteration_bounds = array<i64: 1>, scalar_prefetch = 0 : i64, scratch_operands = 0 : i64, tpu.core_type = #tpu.core_type<tc>, window_params = [{transform_indices = @transform_0, window_bounds = array<i64: 512, 128>}, {pipeline_mode = #tpu.pipeline_mode<synchronous>, transform_indices = @transform_1, window_bounds = array<i64: 128, 128>}, {transform_indices = @transform_2, window_bounds = array<i64: 512, 128>}]} {
    %c0 = arith.constant 0 : index
    %c0_0 = arith.constant 0 : index
    %0 = vector.load %arg1[%c0, %c0_0] : memref<512x128xf32, #tpu.memory_space<vmem>>, vector<512x128xf32>
    %c0_1 = arith.constant 0 : index
    %c0_2 = arith.constant 0 : index
    %1 = vector.load %arg2[%c0_1, %c0_2] : memref<128x128xf32, #tpu.memory_space<vmem>>, vector<128x128xf32>
    %cst = arith.constant dense<0.000000e+00> : vector<512x128xf32>
    %2 = tpu.matmul %0, %1, %cst {dimension_numbers = #tpu.dot_dimension_numbers<[1], [0], [0], [1], [0, 0, 1, 1], [], []>} : vector<512x128xf32>, vector<128x128xf32>, vector<512x128xf32> -> vector<512x128xf32>
    %c0_3 = arith.constant 0 : index
    %c0_4 = arith.constant 0 : index
    %3 = vector.load %arg3[%c0_3, %c0_4] : memref<512x128xf32, #tpu.memory_space<vmem>>, vector<512x128xf32>
    tpu.vector_store %arg3[%c0_3, %c0_4], %2 {strides = array<i32>} : memref<512x128xf32, #tpu.memory_space<vmem>>, vector<512x128xf32>,
    return
  }
  func.func @transform_0(%arg0: i32) -> (i32, i32) {
    %c0_i32 = arith.constant 0 : i32
    %c0_i32_0 = arith.constant 0 : i32
    return %arg0, %c0_i32 : i32, i32
  }
  func.func @transform_1(%arg0: i32) -> (i32, i32) {
    %c0_i32 = arith.constant 0 : i32
    %c0_i32_0 = arith.constant 0 : i32
    %c0_i32_1 = arith.constant 0 : i32
    return %c0_i32, %c0_i32_0 : i32, i32
  }
  func.func @transform_2(%arg0: i32) -> (i32, i32) {
    %c0_i32 = arith.constant 0 : i32
    %c0_i32_0 = arith.constant 0 : i32
    return %arg0, %c0_i32 : i32, i32
  }
}

</mosaic_0001>

<bundles_post_ra>
// kernel: tpu_custom_call.1
= control target key start
LH: loop header
LB: loop body
LE: loop exit
PB: predicated region body
PF: predicated region fallthrough
CT: control target
= control target key end

     0   :  { %7 = vsyncpa [#allocation3], 0  ;;  %s936_s0 = inlined_call_operand.hbm [shape: f32[512,128], index: 0, kind: input, shape index: {}]   ;;  %s937_s1 = inlined_call_operand.hbm [shape: f32[128,128], index: 1, kind: input, shape index: {}]   ;;  %s938_s2 = inlined_call_operand.hbm [shape: f32[512,128], index: 2, kind: output, shape index: {}]  }
   0x1   :  { %8 = vsyncpa [#allocation6], 0 }
   0x2   :  { %9 = vsyncpa [#allocation4], 0  ;;  %s898_s9 = smov [#allocation2]  }
   0x3   :  { %s15_s10 = sshll.u32 %s898_s9, 4  ;;  %s16_s10 = int_to_ptr.vmem [resolvable:$true] %s15_s10 }
   0x4   :  { %s840_s11 = scalar_lea.vmem %s16_s10, 8192  ;;  %p845_p1 = scmp.lt.s32.totalorder %s16_s10, %s16_s10 }
   0x5   :  { %p841_p0 = scmp.ne.s32.totalorder %s16_s10, %s840_s11  ;;  %p846_p2 = scmp.lt.s32.totalorder %s840_s11, %s840_s11 }
   0x7   :  { %p847_p3 = por %p846_p2, %p845_p1 }
   0x9   :  { %p848_p4 = pnand %p847_p3, %p841_p0 }
   0xb   :  { %851 = shalt.err (!%p848_p4)
}
   0xc   :  { %s899_s12 = smov 128   ;;  %s900_s13 = smov 8  }
   0xd   :  { %21 = dma.hbm_to_vmem [thread:$0]  %s936_s0, 8192, %s16_s10, [#allocation3], %s899_s12, %s899_s12, %s900_s13  }
   0xe   :  { %s901_s16 = smov [#allocation5]  }
   0xf   :  { %s27_s17 = sshll.u32 %s901_s16, 4  ;;  %s28_s17 = int_to_ptr.vmem [resolvable:$true] %s27_s17 }
  0x10   :  { %s860_s18 = scalar_lea.vmem %s28_s17, 2048  ;;  %p865_p6 = scmp.lt.s32.totalorder %s28_s17, %s28_s17 }
  0x11   :  { %p861_p5 = scmp.ne.s32.totalorder %s28_s17, %s860_s18  ;;  %p866_p7 = scmp.lt.s32.totalorder %s860_s18, %s860_s18 }
  0x13   :  { %p867_p8 = por %p866_p7, %p865_p6 }
  0x15   :  { %p868_p9 = pnand %p867_p8, %p861_p5 }
  0x17   :  { %871 = shalt.err (!%p868_p9)
}
  0x18   :  { %33 = dma.hbm_to_vmem [thread:$0]  %s937_s1, 2048, %s28_s17, [#allocation6], %s899_s12, %s899_s12, %s900_s13  }
  0x19   :  { %892 = dma.done.wait [#allocation3], 8192  }
  0x1a   :  { %893 = vsyncadd [#allocation3], 4294959104 }
  0x1b   :  { %894 = dma.done.wait [#allocation6], 2048  }
  0x1c   :  { %895 = vsyncadd [#allocation6], 4294965248  ;;  %v119_v0 = vld [vmem:[#allocation5 + $0x78] sm:$0xff]  ;;  %v118_v1 = vld [vmem:[#allocation5 + $0x70] sm:$0xff]  ;;  %s902_s0 = smov [#allocation7]  }
  0x1d   :  { %667 = vmatprep.subr.mxu0 %v119_v0  ;;  %795 = vmatprep.subr.mxu1 %v119_v0  ;;  %v117_v2 = vld [vmem:[#allocation5 + $0x68] sm:$0xff]  ;;  %v116_v3 = vld [vmem:[#allocation5 + $0x60] sm:$0xff]  ;;  %v115_v4 = vld [vmem:[#allocation5 + $0x58] sm:$0xff]  ;;  %s574_s1 = sshll.u32 %s902_s0, 4  ;;  %s575_s1 = int_to_ptr.vmem [resolvable:$true] %s574_s1 }
  0x1e   :  { %668 = vmatpush3.msra.mxu0 %v119_v0  ;;  %811 = vmatpush3.msra.mxu1 %v119_v0  ;;  %v114_v5 = vld [vmem:[#allocation5 + $0x50] sm:$0xff]  ;;  %v113_v6 = vld [vmem:[#allocation5 + $0x48] sm:$0xff]  ;;  %v112_v7 = vld [vmem:[#allocation5 + $0x40] sm:$0xff]  ;;  %s872_s21 = scalar_lea.vmem %s575_s1, 8192  ;;  %p877_p11 = scmp.lt.s32.totalorder %s575_s1, %s575_s1 }
  0x1f   :  { %669 = vmatprep.subr.mxu0 %v118_v1  ;;  %796 = vmatprep.subr.mxu1 %v118_v1  ;;  %v111_v8 = vld [vmem:[#allocation5 + $0x38] sm:$0xff]  ;;  %v110_v9 = vld [vmem:[#allocation5 + $0x30] sm:$0xff]  ;;  %v109_v10 = vld [vmem:[#allocation5 + $0x28] sm:$0xff]  ;;  %p873_p10 = scmp.ne.s32.totalorder %s575_s1, %s872_s21  ;;  %p878_p12 = scmp.lt.s32.totalorder %s872_s21, %s872_s21 }
  0x20   :  { %670 = vmatpush3.msra.mxu0 %v118_v1  ;;  %812 = vmatpush3.msra.mxu1 %v118_v1  ;;  %v108_v11 = vld [vmem:[#allocation5 + $0x20] sm:$0xff]  ;;  %v107_v12 = vld [vmem:[#allocation5 + $0x18] sm:$0xff]  ;;  %v106_v13 = vld [vmem:[#allocation5 + $0x10] sm:$0xff] }
  0x21   :  { %671 = vmatprep.subr.mxu0 %v117_v2  ;;  %797 = vmatprep.subr.mxu1 %v117_v2  ;;  %v105_v14 = vld [vmem:[#allocation5 + $0x8] sm:$0xff]  ;;  %v104_v15 = vld [vmem:[#allocation5] sm:$0xff]  ;;  %v42_v20 = vld [vmem:[#allocation2 + $0x10] sm:$0xff]  ;;  %p879_p13 = por %p878_p12, %p877_p11 }
  0x22   :  { %672 = vmatpush3.msra.mxu0 %v117_v2  ;;  %813 = vmatpush3.msra.mxu1 %v117_v2  ;;  %v40_v16 = vld [vmem:[#allocation2] sm:$0xff]  ;;  %v41_v18 = vld [vmem:[#allocation2 + $0x8] sm:$0xff]  ;;  %v74_v21 = vld [vmem:[#allocation2 + $0x110] sm:$0xff] }
  0x23   :  { %673 = vmatprep.subr.mxu0 %v116_v3  ;;  %798 = vmatprep.subr.mxu1 %v116_v3  ;;  %v72_v17 = vld [vmem:[#allocation2 + $0x100] sm:$0xff]  ;;  %v73_v19 = vld [vmem:[#allocation2 + $0x108] sm:$0xff]  ;;  %v43_v22 = vld [vmem:[#allocation2 + $0x18] sm:$0xff]  ;;  %p880_p0 = pnand %p879_p13, %p873_p10 }
  0x24   :  { %674 = vmatpush3.msra.mxu0 %v116_v3  ;;  %814 = vmatpush3.msra.mxu1 %v116_v3  ;;  %v75_v23 = vld [vmem:[#allocation2 + $0x118] sm:$0xff]  ;;  %v44_v24 = vld [vmem:[#allocation2 + $0x20] sm:$0xff]  ;;  %v45_v26 = vld [vmem:[#allocation2 + $0x28] sm:$0xff] }
  0x25   :  { %675 = vmatprep.subr.mxu0 %v115_v4  ;;  %799 = vmatprep.subr.mxu1 %v115_v4  ;;  %v76_v25 = vld [vmem:[#allocation2 + $0x120] sm:$0xff]  ;;  %v77_v27 = vld [vmem:[#allocation2 + $0x128] sm:$0xff]  ;;  %v46_v28 = vld [vmem:[#allocation2 + $0x30] sm:$0xff] }
  0x26   :  { %676 = vmatpush3.msra.mxu0 %v115_v4  ;;  %815 = vmatpush3.msra.mxu1 %v115_v4  ;;  %v78_v29 = vld [vmem:[#allocation2 + $0x130] sm:$0xff]  ;;  %v47_v30 = vld [vmem:[#allocation2 + $0x38] sm:$0xff]  ;;  %v48_v32 = vld [vmem:[#allocation2 + $0x40] sm:$0xff] }
  0x27   :  { %677 = vmatprep.subr.mxu0 %v114_v5  ;;  %800 = vmatprep.subr.mxu1 %v114_v5  ;;  %v79_v31 = vld [vmem:[#allocation2 + $0x138] sm:$0xff]  ;;  %v80_v33 = vld [vmem:[#allocation2 + $0x140] sm:$0xff]  ;;  %v49_v34 = vld [vmem:[#allocation2 + $0x48] sm:$0xff] }
  0x28   :  { %678 = vmatpush3.msra.mxu0 %v114_v5  ;;  %816 = vmatpush3.msra.mxu1 %v114_v5  ;;  %v81_v35 = vld [vmem:[#allocation2 + $0x148] sm:$0xff]  ;;  %v50_v36 = vld [vmem:[#allocation2 + $0x50] sm:$0xff]  ;;  %v51_v38 = vld [vmem:[#allocation2 + $0x58] sm:$0xff] }
  0x29   :  { %679 = vmatprep.subr.mxu0 %v113_v6  ;;  %801 = vmatprep.subr.mxu1 %v113_v6  ;;  %v82_v37 = vld [vmem:[#allocation2 + $0x150] sm:$0xff]  ;;  %v83_v39 = vld [vmem:[#allocation2 + $0x158] sm:$0xff]  ;;  %v52_v40 = vld [vmem:[#allocation2 + $0x60] sm:$0xff] }
  0x2a   :  { %680 = vmatpush3.msra.mxu0 %v113_v6  ;;  %817 = vmatpush3.msra.mxu1 %v113_v6  ;;  %v84_v41 = vld [vmem:[#allocation2 + $0x160] sm:$0xff]  ;;  %v53_v42 = vld [vmem:[#allocation2 + $0x68] sm:$0xff]  ;;  %v54_v44 = vld [vmem:[#allocation2 + $0x70] sm:$0xff] }
  0x2b   :  { %681 = vmatprep.subr.mxu0 %v112_v7  ;;  %802 = vmatprep.subr.mxu1 %v112_v7  ;;  %v85_v43 = vld [vmem:[#allocation2 + $0x168] sm:$0xff]  ;;  %v86_v45 = vld [vmem:[#allocation2 + $0x170] sm:$0xff]  ;;  %v55_v46 = vld [vmem:[#allocation2 + $0x78] sm:$0xff] }
  0x2c   :  { %682 = vmatpush3.msra.mxu0 %v112_v7  ;;  %818 = vmatpush3.msra.mxu1 %v112_v7  ;;  %v87_v47 = vld [vmem:[#allocation2 + $0x178] sm:$0xff]  ;;  %v56_v48 = vld [vmem:[#allocation2 + $0x80] sm:$0xff]  ;;  %v57_v50 = vld [vmem:[#allocation2 + $0x88] sm:$0xff] }
  0x2d   :  { %683 = vmatprep.subr.mxu0 %v111_v8  ;;  %803 = vmatprep.subr.mxu1 %v111_v8  ;;  %v88_v49 = vld [vmem:[#allocation2 + $0x180] sm:$0xff]  ;;  %v89_v51 = vld [vmem:[#allocation2 + $0x188] sm:$0xff]  ;;  %v58_v52 = vld [vmem:[#allocation2 + $0x90] sm:$0xff] }
  0x2e   :  { %684 = vmatpush3.msra.mxu0 %v111_v8  ;;  %819 = vmatpush3.msra.mxu1 %v111_v8  ;;  %v90_v53 = vld [vmem:[#allocation2 + $0x190] sm:$0xff]  ;;  %v59_v54 = vld [vmem:[#allocation2 + $0x98] sm:$0xff]  ;;  %v60_v56 = vld [vmem:[#allocation2 + $0xa0] sm:$0xff] }
  0x2f   :  { %685 = vmatprep.subr.mxu0 %v110_v9  ;;  %804 = vmatprep.subr.mxu1 %v110_v9  ;;  %v91_v55 = vld [vmem:[#allocation2 + $0x198] sm:$0xff]  ;;  %v92_v57 = vld [vmem:[#allocation2 + $0x1a0] sm:$0xff]  ;;  %v61_v58 = vld [vmem:[#allocation2 + $0xa8] sm:$0xff] }
  0x30   :  { %686 = vmatpush3.msra.mxu0 %v110_v9  ;;  %820 = vmatpush3.msra.mxu1 %v110_v9  ;;  %v93_v59 = vld [vmem:[#allocation2 + $0x1a8] sm:$0xff]  ;;  %v62_v60 = vld [vmem:[#allocation2 + $0xb0] sm:$0xff]  ;;  %v63_v62 = vld [vmem:[#allocation2 + $0xb8] sm:$0xff] }
  0x31   :  { %687 = vmatprep.subr.mxu0 %v109_v10  ;;  %805 = vmatprep.subr.mxu1 %v109_v10  ;;  %v94_v61 = vld [vmem:[#allocation2 + $0x1b0] sm:$0xff]  ;;  %v95_v63 = vld [vmem:[#allocation2 + $0x1b8] sm:$0xff]  ;;  %v64_v0 = vld [vmem:[#allocation2 + $0xc0] sm:$0xff] }
  0x32   :  { %688 = vmatpush3.msra.mxu0 %v109_v10  ;;  %821 = vmatpush3.msra.mxu1 %v109_v10  ;;  %v96_v1 = vld [vmem:[#allocation2 + $0x1c0] sm:$0xff]  ;;  %v65_v2 = vld [vmem:[#allocation2 + $0xc8] sm:$0xff]  ;;  %v66_v4 = vld [vmem:[#allocation2 + $0xd0] sm:$0xff] }
  0x33   :  { %689 = vmatprep.subr.mxu0 %v108_v11  ;;  %806 = vmatprep.subr.mxu1 %v108_v11  ;;  %v97_v3 = vld [vmem:[#allocation2 + $0x1c8] sm:$0xff]  ;;  %v98_v5 = vld [vmem:[#allocation2 + $0x1d0] sm:$0xff]  ;;  %v67_v6 = vld [vmem:[#allocation2 + $0xd8] sm:$0xff] }
  0x34   :  { %690 = vmatpush3.msra.mxu0 %v108_v11  ;;  %822 = vmatpush3.msra.mxu1 %v108_v11  ;;  %v99_v7 = vld [vmem:[#allocation2 + $0x1d8] sm:$0xff]  ;;  %v68_v8 = vld [vmem:[#allocation2 + $0xe0] sm:$0xff]  ;;  %v69_v10 = vld [vmem:[#allocation2 + $0xe8] sm:$0xff] }
  0x35   :  { %691 = vmatprep.subr.mxu0 %v107_v12  ;;  %807 = vmatprep.subr.mxu1 %v107_v12  ;;  %v100_v9 = vld [vmem:[#allocation2 + $0x1e0] sm:$0xff]  ;;  %v101_v11 = vld [vmem:[#allocation2 + $0x1e8] sm:$0xff] }
  0x36   :  { %692 = vmatpush3.msra.mxu0 %v107_v12  ;;  %823 = vmatpush3.msra.mxu1 %v107_v12  ;;  %v70_v12 = vld [vmem:[#allocation2 + $0xf0] sm:$0xff] }
  0x37   :  { %693 = vmatprep.subr.mxu0 %v106_v13  ;;  %808 = vmatprep.subr.mxu1 %v106_v13 }
  0x38   :  { %694 = vmatpush3.msra.mxu0 %v106_v13  ;;  %824 = vmatpush3.msra.mxu1 %v106_v13  ;;  %v102_v13 = vld [vmem:[#allocation2 + $0x1f0] sm:$0xff] }
  0x39   :  { %695 = vmatprep.subr.mxu0 %v105_v14  ;;  %809 = vmatprep.subr.mxu1 %v105_v14 }
  0x3a   :  { %696 = vmatpush3.msra.mxu0 %v105_v14  ;;  %825 = vmatpush3.msra.mxu1 %v105_v14  ;;  %v71_v14 = vld [vmem:[#allocation2 + $0xf8] sm:$0xff] }
  0x3b   :  { %697 = vmatprep.subr.mxu0 %v104_v15  ;;  %810 = vmatprep.subr.mxu1 %v104_v15 }
  0x3c   :  { %698 = vmatpush3.msra.mxu0 %v104_v15  ;;  %826 = vmatpush3.msra.mxu1 %v104_v15  ;;  %v103_v15 = vld [vmem:[#allocation2 + $0x1f8] sm:$0xff] }
  0x3d   :  { %699 = vmatprep.mubr.f32.mxu0 %v40_v16  ;;  %747 = vmatprep.mubr.f32.mxu1 %v72_v17 }
  0x3e   :  { %700 = vmatmul.mubr.f32.vlgmr.msra.gmra.mxu0 %v41_v18  ;;  %748 = vmatmul.mubr.f32.vlgmr.msra.gmra.mxu1 %v73_v19 }
  0x3f   :  { %702 = vmatprep.mubr.f32.mxu0 %v42_v20  ;;  %750 = vmatprep.mubr.f32.mxu1 %v74_v21 }
  0x42   :  { %703 = vmatmul.mubr.f32.gmra.mxu0 %v43_v22  ;;  %751 = vmatmul.mubr.f32.gmra.mxu1 %v75_v23 }
  0x43   :  { %705 = vmatprep.mubr.f32.mxu0 %v44_v24  ;;  %753 = vmatprep.mubr.f32.mxu1 %v76_v25 }
  0x46   :  { %706 = vmatmul.mubr.f32.gmra.mxu0 %v45_v26  ;;  %754 = vmatmul.mubr.f32.gmra.mxu1 %v77_v27 }
  0x47   :  { %708 = vmatprep.mubr.f32.mxu0 %v46_v28  ;;  %756 = vmatprep.mubr.f32.mxu1 %v78_v29 }
  0x4a   :  { %709 = vmatmul.mubr.f32.gmra.mxu0 %v47_v30  ;;  %757 = vmatmul.mubr.f32.gmra.mxu1 %v79_v31 }
  0x4b   :  { %711 = vmatprep.mubr.f32.mxu0 %v48_v32  ;;  %759 = vmatprep.mubr.f32.mxu1 %v80_v33 }
  0x4e   :  { %712 = vmatmul.mubr.f32.gmra.mxu0 %v49_v34  ;;  %760 = vmatmul.mubr.f32.gmra.mxu1 %v81_v35 }
  0x4f   :  { %714 = vmatprep.mubr.f32.mxu0 %v50_v36  ;;  %762 = vmatprep.mubr.f32.mxu1 %v82_v37 }
  0x52   :  { %715 = vmatmul.mubr.f32.gmra.mxu0 %v51_v38  ;;  %763 = vmatmul.mubr.f32.gmra.mxu1 %v83_v39 }
  0x53   :  { %717 = vmatprep.mubr.f32.mxu0 %v52_v40  ;;  %765 = vmatprep.mubr.f32.mxu1 %v84_v41 }
  0x56   :  { %718 = vmatmul.mubr.f32.gmra.mxu0 %v53_v42  ;;  %766 = vmatmul.mubr.f32.gmra.mxu1 %v85_v43 }
  0x57   :  { %720 = vmatprep.mubr.f32.mxu0 %v54_v44  ;;  %768 = vmatprep.mubr.f32.mxu1 %v86_v45 }
  0x5a   :  { %721 = vmatmul.mubr.f32.gmra.mxu0 %v55_v46  ;;  %769 = vmatmul.mubr.f32.gmra.mxu1 %v87_v47 }
  0x5b   :  { %723 = vmatprep.mubr.f32.mxu0 %v56_v48  ;;  %771 = vmatprep.mubr.f32.mxu1 %v88_v49 }
  0x5e   :  { %724 = vmatmul.mubr.f32.gmra.mxu0 %v57_v50  ;;  %772 = vmatmul.mubr.f32.gmra.mxu1 %v89_v51 }
  0x5f   :  { %726 = vmatprep.mubr.f32.mxu0 %v58_v52  ;;  %774 = vmatprep.mubr.f32.mxu1 %v90_v53 }
  0x62   :  { %727 = vmatmul.mubr.f32.gmra.mxu0 %v59_v54  ;;  %775 = vmatmul.mubr.f32.gmra.mxu1 %v91_v55 }
  0x63   :  { %729 = vmatprep.mubr.f32.mxu0 %v60_v56  ;;  %777 = vmatprep.mubr.f32.mxu1 %v92_v57 }
  0x66   :  { %730 = vmatmul.mubr.f32.gmra.mxu0 %v61_v58  ;;  %778 = vmatmul.mubr.f32.gmra.mxu1 %v93_v59 }
  0x67   :  { %732 = vmatprep.mubr.f32.mxu0 %v62_v60  ;;  %780 = vmatprep.mubr.f32.mxu1 %v94_v61 }
  0x6a   :  { %733 = vmatmul.mubr.f32.gmra.mxu0 %v63_v62  ;;  %781 = vmatmul.mubr.f32.gmra.mxu1 %v95_v63 }
  0x6b   :  { %735 = vmatprep.mubr.f32.mxu0 %v64_v0  ;;  %783 = vmatprep.mubr.f32.mxu1 %v96_v1 }
  0x6e   :  { %736 = vmatmul.mubr.f32.gmra.mxu0 %v65_v2  ;;  %784 = vmatmul.mubr.f32.gmra.mxu1 %v97_v3 }
  0x6f   :  { %738 = vmatprep.mubr.f32.mxu0 %v66_v4  ;;  %786 = vmatprep.mubr.f32.mxu1 %v98_v5 }
  0x72   :  { %739 = vmatmul.mubr.f32.gmra.mxu0 %v67_v6  ;;  %787 = vmatmul.mubr.f32.gmra.mxu1 %v99_v7 }
  0x73   :  { %741 = vmatprep.mubr.f32.mxu0 %v68_v8  ;;  %789 = vmatprep.mubr.f32.mxu1 %v100_v9 }
  0x76   :  { %742 = vmatmul.mubr.f32.gmra.mxu0 %v69_v10  ;;  %790 = vmatmul.mubr.f32.gmra.mxu1 %v101_v11 }
  0x77   :  { %744 = vmatprep.mubr.f32.mxu0 %v70_v12  ;;  %792 = vmatprep.mubr.f32.mxu1 %v102_v13 }
  0x7a   :  { %745 = vmatmul.mubr.f32.gmra.mxu0 %v71_v14  ;;  %793 = vmatmul.mubr.f32.gmra.mxu1 %v103_v15 }
  0xfe   :  { %v701_v16 = vpop.f32.mrf.mxu0  ;;  %v749_v17 = vpop.f32.mrf.mxu1 }
  0xff   :  { %506 = vst [vmem:[#allocation7 + $0x8] sm:$0xff] %v701_v16  ;;  %538 = vst [vmem:[#allocation7 + $0x108] sm:$0xff] %v749_v17 }
 0x100   :  { %v186_v18 = vpop.f32.mrf.mxu0  ;;  %v346_v19 = vpop.f32.mrf.mxu1 }
 0x101   :  { %505 = vst [vmem:[#allocation7] sm:$0xff] %v186_v18  ;;  %537 = vst [vmem:[#allocation7 + $0x100] sm:$0xff] %v346_v19 }
 0x102   :  { %v704_v20 = vpop.f32.mrf.mxu0  ;;  %v752_v21 = vpop.f32.mrf.mxu1 }
 0x103   :  { %508 = vst [vmem:[#allocation7 + $0x18] sm:$0xff] %v704_v20  ;;  %540 = vst [vmem:[#allocation7 + $0x118] sm:$0xff] %v752_v21 }
 0x104   :  { %v196_v22 = vpop.f32.mrf.mxu0  ;;  %v356_v23 = vpop.f32.mrf.mxu1 }
 0x105   :  { %507 = vst [vmem:[#allocation7 + $0x10] sm:$0xff] %v196_v22  ;;  %539 = vst [vmem:[#allocation7 + $0x110] sm:$0xff] %v356_v23 }
 0x106   :  { %v707_v24 = vpop.f32.mrf.mxu0  ;;  %v755_v25 = vpop.f32.mrf.mxu1 }
 0x107   :  { %510 = vst [vmem:[#allocation7 + $0x28] sm:$0xff] %v707_v24  ;;  %542 = vst [vmem:[#allocation7 + $0x128] sm:$0xff] %v755_v25 }
 0x108   :  { %v206_v26 = vpop.f32.mrf.mxu0  ;;  %v366_v27 = vpop.f32.mrf.mxu1 }
 0x109   :  { %509 = vst [vmem:[#allocation7 + $0x20] sm:$0xff] %v206_v26  ;;  %541 = vst [vmem:[#allocation7 + $0x120] sm:$0xff] %v366_v27 }
 0x10a   :  { %v710_v28 = vpop.f32.mrf.mxu0  ;;  %v758_v29 = vpop.f32.mrf.mxu1 }
 0x10b   :  { %512 = vst [vmem:[#allocation7 + $0x38] sm:$0xff] %v710_v28  ;;  %544 = vst [vmem:[#allocation7 + $0x138] sm:$0xff] %v758_v29 }
 0x10c   :  { %v216_v30 = vpop.f32.mrf.mxu0  ;;  %v376_v31 = vpop.f32.mrf.mxu1 }
 0x10d   :  { %511 = vst [vmem:[#allocation7 + $0x30] sm:$0xff] %v216_v30  ;;  %543 = vst [vmem:[#allocation7 + $0x130] sm:$0xff] %v376_v31 }
 0x10e   :  { %v713_v32 = vpop.f32.mrf.mxu0  ;;  %v761_v33 = vpop.f32.mrf.mxu1 }
 0x10f   :  { %514 = vst [vmem:[#allocation7 + $0x48] sm:$0xff] %v713_v32  ;;  %546 = vst [vmem:[#allocation7 + $0x148] sm:$0xff] %v761_v33 }
 0x110   :  { %v226_v34 = vpop.f32.mrf.mxu0  ;;  %v386_v35 = vpop.f32.mrf.mxu1 }
 0x111   :  { %513 = vst [vmem:[#allocation7 + $0x40] sm:$0xff] %v226_v34  ;;  %545 = vst [vmem:[#allocation7 + $0x140] sm:$0xff] %v386_v35 }
 0x112   :  { %v716_v36 = vpop.f32.mrf.mxu0  ;;  %v764_v37 = vpop.f32.mrf.mxu1 }
 0x113   :  { %516 = vst [vmem:[#allocation7 + $0x58] sm:$0xff] %v716_v36  ;;  %548 = vst [vmem:[#allocation7 + $0x158] sm:$0xff] %v764_v37 }
 0x114   :  { %v236_v38 = vpop.f32.mrf.mxu0  ;;  %v396_v39 = vpop.f32.mrf.mxu1 }
 0x115   :  { %515 = vst [vmem:[#allocation7 + $0x50] sm:$0xff] %v236_v38  ;;  %547 = vst [vmem:[#allocation7 + $0x150] sm:$0xff] %v396_v39 }
 0x116   :  { %v719_v40 = vpop.f32.mrf.mxu0  ;;  %v767_v41 = vpop.f32.mrf.mxu1 }
 0x117   :  { %518 = vst [vmem:[#allocation7 + $0x68] sm:$0xff] %v719_v40  ;;  %550 = vst [vmem:[#allocation7 + $0x168] sm:$0xff] %v767_v41 }
 0x118   :  { %v246_v42 = vpop.f32.mrf.mxu0  ;;  %v406_v43 = vpop.f32.mrf.mxu1 }
 0x119   :  { %517 = vst [vmem:[#allocation7 + $0x60] sm:$0xff] %v246_v42  ;;  %549 = vst [vmem:[#allocation7 + $0x160] sm:$0xff] %v406_v43 }
 0x11a   :  { %v722_v44 = vpop.f32.mrf.mxu0  ;;  %v770_v45 = vpop.f32.mrf.mxu1 }
 0x11b   :  { %520 = vst [vmem:[#allocation7 + $0x78] sm:$0xff] %v722_v44  ;;  %552 = vst [vmem:[#allocation7 + $0x178] sm:$0xff] %v770_v45 }
 0x11c   :  { %v256_v46 = vpop.f32.mrf.mxu0  ;;  %v416_v47 = vpop.f32.mrf.mxu1 }
 0x11d   :  { %519 = vst [vmem:[#allocation7 + $0x70] sm:$0xff] %v256_v46  ;;  %551 = vst [vmem:[#allocation7 + $0x170] sm:$0xff] %v416_v47 }
 0x11e   :  { %v725_v48 = vpop.f32.mrf.mxu0  ;;  %v773_v49 = vpop.f32.mrf.mxu1 }
 0x11f   :  { %522 = vst [vmem:[#allocation7 + $0x88] sm:$0xff] %v725_v48  ;;  %554 = vst [vmem:[#allocation7 + $0x188] sm:$0xff] %v773_v49 }
 0x120   :  { %v266_v50 = vpop.f32.mrf.mxu0  ;;  %v426_v51 = vpop.f32.mrf.mxu1 }
 0x121   :  { %521 = vst [vmem:[#allocation7 + $0x80] sm:$0xff] %v266_v50  ;;  %553 = vst [vmem:[#allocation7 + $0x180] sm:$0xff] %v426_v51 }
 0x122   :  { %v728_v52 = vpop.f32.mrf.mxu0  ;;  %v776_v53 = vpop.f32.mrf.mxu1 }
 0x123   :  { %524 = vst [vmem:[#allocation7 + $0x98] sm:$0xff] %v728_v52  ;;  %556 = vst [vmem:[#allocation7 + $0x198] sm:$0xff] %v776_v53 }
 0x124   :  { %v276_v54 = vpop.f32.mrf.mxu0  ;;  %v436_v55 = vpop.f32.mrf.mxu1 }
 0x125   :  { %523 = vst [vmem:[#allocation7 + $0x90] sm:$0xff] %v276_v54  ;;  %555 = vst [vmem:[#allocation7 + $0x190] sm:$0xff] %v436_v55 }
 0x126   :  { %v731_v56 = vpop.f32.mrf.mxu0  ;;  %v779_v57 = vpop.f32.mrf.mxu1 }
 0x127   :  { %526 = vst [vmem:[#allocation7 + $0xa8] sm:$0xff] %v731_v56  ;;  %558 = vst [vmem:[#allocation7 + $0x1a8] sm:$0xff] %v779_v57 }
 0x128   :  { %v286_v58 = vpop.f32.mrf.mxu0  ;;  %v446_v59 = vpop.f32.mrf.mxu1 }
 0x129   :  { %525 = vst [vmem:[#allocation7 + $0xa0] sm:$0xff] %v286_v58  ;;  %557 = vst [vmem:[#allocation7 + $0x1a0] sm:$0xff] %v446_v59 }
 0x12a   :  { %v734_v60 = vpop.f32.mrf.mxu0  ;;  %v782_v61 = vpop.f32.mrf.mxu1 }
 0x12b   :  { %528 = vst [vmem:[#allocation7 + $0xb8] sm:$0xff] %v734_v60  ;;  %560 = vst [vmem:[#allocation7 + $0x1b8] sm:$0xff] %v782_v61 }
 0x12c   :  { %v296_v62 = vpop.f32.mrf.mxu0  ;;  %v456_v63 = vpop.f32.mrf.mxu1 }
 0x12d   :  { %527 = vst [vmem:[#allocation7 + $0xb0] sm:$0xff] %v296_v62  ;;  %559 = vst [vmem:[#allocation7 + $0x1b0] sm:$0xff] %v456_v63 }
 0x12e   :  { %v737_v0 = vpop.f32.mrf.mxu0  ;;  %v785_v1 = vpop.f32.mrf.mxu1 }
 0x12f   :  { %530 = vst [vmem:[#allocation7 + $0xc8] sm:$0xff] %v737_v0  ;;  %562 = vst [vmem:[#allocation7 + $0x1c8] sm:$0xff] %v785_v1 }
 0x130   :  { %v306_v2 = vpop.f32.mrf.mxu0  ;;  %v466_v3 = vpop.f32.mrf.mxu1 }
 0x131   :  { %529 = vst [vmem:[#allocation7 + $0xc0] sm:$0xff] %v306_v2  ;;  %561 = vst [vmem:[#allocation7 + $0x1c0] sm:$0xff] %v466_v3 }
 0x132   :  { %v740_v4 = vpop.f32.mrf.mxu0  ;;  %v788_v5 = vpop.f32.mrf.mxu1 }
 0x133   :  { %532 = vst [vmem:[#allocation7 + $0xd8] sm:$0xff] %v740_v4  ;;  %564 = vst [vmem:[#allocation7 + $0x1d8] sm:$0xff] %v788_v5 }
 0x134   :  { %v316_v6 = vpop.f32.mrf.mxu0  ;;  %v476_v7 = vpop.f32.mrf.mxu1 }
 0x135   :  { %531 = vst [vmem:[#allocation7 + $0xd0] sm:$0xff] %v316_v6  ;;  %563 = vst [vmem:[#allocation7 + $0x1d0] sm:$0xff] %v476_v7 }
 0x136   :  { %v743_v8 = vpop.f32.mrf.mxu0  ;;  %v791_v9 = vpop.f32.mrf.mxu1 }
 0x137   :  { %534 = vst [vmem:[#allocation7 + $0xe8] sm:$0xff] %v743_v8  ;;  %566 = vst [vmem:[#allocation7 + $0x1e8] sm:$0xff] %v791_v9 }
 0x138   :  { %v326_v10 = vpop.f32.mrf.mxu0  ;;  %v486_v11 = vpop.f32.mrf.mxu1 }
 0x139   :  { %533 = vst [vmem:[#allocation7 + $0xe0] sm:$0xff] %v326_v10  ;;  %565 = vst [vmem:[#allocation7 + $0x1e0] sm:$0xff] %v486_v11 }
 0x13a   :  { %v746_v12 = vpop.f32.mrf.mxu0  ;;  %v794_v13 = vpop.f32.mrf.mxu1 }
 0x13b   :  { %536 = vst [vmem:[#allocation7 + $0xf8] sm:$0xff] %v746_v12  ;;  %568 = vst [vmem:[#allocation7 + $0x1f8] sm:$0xff] %v794_v13 }
 0x13c   :  { %v336_v14 = vpop.f32.mrf.mxu0  ;;  %v496_v15 = vpop.f32.mrf.mxu1 }
 0x13d   :  { %535 = vst [vmem:[#allocation7 + $0xf0] sm:$0xff] %v336_v14  ;;  %567 = vst [vmem:[#allocation7 + $0x1f0] sm:$0xff] %v496_v15 }
 0x13e   :  { %883 = shalt.err (!%p880_p0)
}
 0x13f   :  { %580 = dma.vmem_to_hbm [thread:$0]  %s575_s1, 8192, %s938_s2, [#allocation4], %s899_s12, %s899_s12, %s900_s13  }
 0x140   :  { %896 = dma.done.wait [#allocation4], 8192  }
 0x141   :  { %897 = vsyncadd [#allocation4], 4294959104 }
 0x142   :  { %584 = vsyncpa [#allocation3], 1 }
 0x143   :  { %585 = vsyncpa [#allocation6], 1 }
 0x144   :  { %586 = vsyncpa [#allocation4], 1 }

</bundles_post_ra>
